<compile_context>
chip_gen: v7x
topology: tpu7x:2x2x1
jax: 0.10.0
libtpu: 0.0.40
codegen_flags: <defaults>
</compile_context>

<pallas_src>
import jax
import jax.numpy as jnp
from jax.experimental import pallas as pl
from jax.experimental.pallas import tpu as pltpu


def _attn_mask_kernel(jam_ref, apm_ref, asm_ref, out_ref):
    """Assemble a (Bt, L, L) block of the attention mask, bool end-to-end."""
    Bt, Lj, _ = jam_ref.shape
    La = asm_ref.shape[-1]

    # Top-left: copy the existing joint self-attention mask.
    out_ref[:, :Lj, :Lj] = jam_ref[...]
    # Top-right: joint tokens may NOT attend answer tokens -> True (masked).
    out_ref[:, :Lj, Lj:] = jnp.ones((Bt, Lj, La), dtype=jnp.bool_)
    # Bottom-left: answer tokens freely attend the joint features -> False.
    out_ref[:, Lj:, :Lj] = jnp.zeros((Bt, La, Lj), dtype=jnp.bool_)
    # Bottom-right: answer self-attention = padding OR sequential (causal).
    # NOTE: if the model layout allows padding Lj to a multiple of 128, this
    # store (and the two constant fills) becomes a lane-aligned unmasked vst.
    out_ref[:, Lj:, Lj:] = jnp.logical_or(apm_ref[...], asm_ref[...])


def _as_bool(x):
    return x if x.dtype == jnp.bool_ else x.astype(jnp.bool_)


def append_answer(joint_features, joint_masks, answer_features, answer_masks,
                  *, vmem_block_budget_bytes=4 << 20):
    """Pallas version of BaseUniqueTransformer.append_answer.

    joint_features:  (B, Lj, D) float
    joint_masks:     (padding (B,1,1,Lj) bool, attention (B,1,Lj,Lj) bool)
    answer_features: (B, La, D) float
    answer_masks:    (padding (B,1,1,La) bool, sequential (B,1,La,La) bool)
    """
    joint_padding_mask, joint_attention_mask = joint_masks
    answer_padding_mask, answer_sequential_mask = answer_masks

    B, Lj, _ = joint_features.shape
    La = answer_features.shape[1]
    L = Lj + La

    # Pure data movement: leave to XLA (plain HBM copies, no VMEM staging).
    out_features = jnp.concatenate([joint_features, answer_features], axis=1)
    out_padding = jnp.concatenate(
        [joint_padding_mask, answer_padding_mask], axis=-1)

    # bool end-to-end: no astype passes (bool is already 1 byte in HBM).
    jam = _as_bool(joint_attention_mask).reshape(B, Lj, Lj)
    apm = _as_bool(answer_padding_mask).reshape(B, 1, La)
    asm_ = _as_bool(answer_sequential_mask).reshape(B, La, La)

    # Batch elements per grid step: amortize per-step overhead while keeping
    # the single-buffered block set under a small VMEM budget (double-buffered
    # it stays well inside even v5e's 16 MiB default scoped limit).
    per_batch_bytes = L * L + Lj * Lj + La * La + La          # 1 byte / bool
    cap = max(1, vmem_block_budget_bytes // max(per_batch_bytes, 1))
    Bt = 1
    for d in range(1, B + 1):                                  # largest divisor <= cap
        if B % d == 0 and d <= cap:
            Bt = d
    num_blocks = B // Bt

    # Memory-bound, no flops worth counting: advise XLA accordingly.
    bytes_accessed = jam.size + apm.size + asm_.size + B * L * L   # 1 byte each
    cost = pl.CostEstimate(flops=0, transcendentals=0,
                           bytes_accessed=bytes_accessed)

    compiler_kwargs = dict(dimension_semantics=("parallel",))
    dbuf_bytes = 2 * Bt * per_batch_bytes
    if dbuf_bytes > (24 << 20):
        # Large-L safety valve (mostly for v5e's 16 MiB default scoped VMEM).
        compiler_kwargs["vmem_limit_bytes"] = min(dbuf_bytes + (4 << 20),
                                                  48 << 20)

    attn = pl.pallas_call(
        _attn_mask_kernel,
        out_shape=jax.ShapeDtypeStruct((B, L, L), jnp.bool_),
        grid=(num_blocks,),
        in_specs=[
            pl.BlockSpec((Bt, Lj, Lj), lambda b: (b, 0, 0)),
            pl.BlockSpec((Bt, 1, La), lambda b: (b, 0, 0)),
            pl.BlockSpec((Bt, La, La), lambda b: (b, 0, 0)),
        ],
        out_specs=pl.BlockSpec((Bt, L, L), lambda b: (b, 0, 0)),
        compiler_params=pltpu.CompilerParams(**compiler_kwargs),
        cost_estimate=cost,
    )(jam, apm, asm_)

    # Restore PyTorch shapes: (B,1,L,L) bool (already bool -> no extra pass).
    out_attn = attn.reshape(B, 1, L, L)
    return out_features, (out_padding, out_attn)


def _reference_append_answer(joint_features, joint_masks,
                             answer_features, answer_masks):
    """Pure-JAX mirror of the PyTorch code for correctness checking."""
    answer_padding_mask, answer_sequential_mask = answer_masks
    answer_self_attention_mask = jnp.logical_or(answer_padding_mask,
                                                answer_sequential_mask)
    Lj = joint_features.shape[1]
    La = answer_features.shape[1]
    joint_features = jnp.concatenate([joint_features, answer_features], axis=1)
    joint_padding_mask, joint_attention_mask = joint_masks
    joint_padding_mask = jnp.concatenate(
        [joint_padding_mask, answer_padding_mask], axis=-1)
    B = joint_features.shape[0]
    joint_features_mask_answer = jnp.ones((B, 1, Lj, La), dtype=bool)
    joint_attention_mask = jnp.concatenate(
        [joint_attention_mask, joint_features_mask_answer], axis=-1)
    answer_attend_joint = jnp.zeros((B, 1, La, Lj), dtype=bool)
    answer_attend_joint = jnp.concatenate(
        [answer_attend_joint, answer_self_attention_mask], axis=-1)
    joint_attention_mask = jnp.concatenate(
        [joint_attention_mask, answer_attend_joint], axis=-2)
    return joint_features, (joint_padding_mask, joint_attention_mask)


if __name__ == "__main__":
    B, Lj, La, D = 2, 16, 8, 32

    key = jax.random.PRNGKey(0)
    k1, k2 = jax.random.split(key, 2)
    joint_features = jax.random.normal(k1, (B, Lj, D), jnp.float32)
    answer_features = jax.random.normal(k2, (B, La, D), jnp.float32)

    # Deterministic masks (True = masked / padded, as in the PyTorch code).
    joint_lens = jnp.array([Lj, Lj - 4])
    pos_j = jnp.arange(Lj)
    joint_padding_mask = (pos_j[None, :] >= joint_lens[:, None])
    joint_padding_mask = joint_padding_mask[:, None, None, :]          # (B,1,1,Lj)
    joint_attention_mask = jnp.broadcast_to(
        joint_padding_mask, (B, 1, Lj, Lj))                            # (B,1,Lj,Lj)

    answer_lens = jnp.array([La, La - 3])
    pos_a = jnp.arange(La)
    answer_padding_mask = (pos_a[None, :] >= answer_lens[:, None])
    answer_padding_mask = answer_padding_mask[:, None, None, :]        # (B,1,1,La)
    causal = pos_a[None, :] > pos_a[:, None]                           # (La,La)
    answer_sequential_mask = jnp.broadcast_to(
        causal[None, None, :, :], (B, 1, La, La))                      # (B,1,La,La)

    joint_masks = (joint_padding_mask, joint_attention_mask)
    answer_masks = (answer_padding_mask, answer_sequential_mask)

    feats, (pad, attn) = append_answer(
        joint_features, joint_masks, answer_features, answer_masks)
    jax.block_until_ready((feats, pad, attn))

    ref_feats, (ref_pad, ref_attn) = _reference_append_answer(
        joint_features, joint_masks, answer_features, answer_masks)

    assert feats.shape == (B, Lj + La, D)
    assert pad.shape == (B, 1, 1, Lj + La) and pad.dtype == jnp.bool_
    assert attn.shape == (B, 1, Lj + La, Lj + La) and attn.dtype == jnp.bool_
    assert jnp.allclose(feats, ref_feats)
    assert jnp.array_equal(pad, ref_pad)
    assert jnp.array_equal(attn, ref_attn)

    print("KERNEL_OK")
</pallas_src>

<mosaic_0001>
module attributes {stable_mosaic.version = 11 : i64} {
  func.func @_attn_mask_kernel(%arg0: i32, %arg1: memref<2x16x16xi32, #tpu.memory_space<vmem>>, %arg2: memref<2x1x8xi32, #tpu.memory_space<vmem>>, %arg3: memref<2x8x8xi32, #tpu.memory_space<vmem>>, %arg4: memref<2x24x24xi32, #tpu.memory_space<vmem>>) attributes {dimension_semantics = [#tpu.dimension_semantics<parallel>], iteration_bounds = array<i64: 1>, scalar_prefetch = 0 : i64, scratch_operands = 0 : i64, tpu.core_type = #tpu.core_type<tc>, window_params = [{transform_indices = @transform_0, window_bounds = array<i64: 2, 16, 16>}, {transform_indices = @transform_1, window_bounds = array<i64: 2, 1, 8>}, {transform_indices = @transform_2, window_bounds = array<i64: 2, 8, 8>}, {transform_indices = @transform_3, window_bounds = array<i64: 2, 24, 24>}]} {
    %c0 = arith.constant 0 : index
    %c0_0 = arith.constant 0 : index
    %c0_1 = arith.constant 0 : index
    %0 = vector.load %arg1[%c0, %c0_0, %c0_1] : memref<2x16x16xi32, #tpu.memory_space<vmem>>, vector<2x16x16xi32>
    %cst = arith.constant dense<0> : vector<2x16x16xi32>
    %1 = arith.cmpi ne, %0, %cst : vector<2x16x16xi32>
    %c0_2 = arith.constant 0 : index
    %c0_3 = arith.constant 0 : index
    %c0_4 = arith.constant 0 : index
    %2 = vector.load %arg4[%c0_2, %c0_3, %c0_4] : memref<2x24x24xi32, #tpu.memory_space<vmem>>, vector<2x16x16xi32>
    %3 = arith.extui %1 : vector<2x16x16xi1> to vector<2x16x16xi32>
    %cst_5 = arith.constant dense<0> : vector<2x16x16xi32>
    %4 = arith.cmpi ne, %2, %cst_5 : vector<2x16x16xi32>
    tpu.vector_store %arg4[%c0_2, %c0_3, %c0_4], %3 {strides = array<i32>} : memref<2x24x24xi32, #tpu.memory_space<vmem>>, vector<2x16x16xi32>,
    %true = arith.constant true
    %5 = vector.broadcast %true : i1 to vector<2x16x8xi1>
    %c0_6 = arith.constant 0 : index
    %c0_7 = arith.constant 0 : index
    %c16 = arith.constant 16 : index
    %6 = vector.load %arg4[%c0_6, %c0_7, %c16] : memref<2x24x24xi32, #tpu.memory_space<vmem>>, vector<2x16x8xi32>
    %7 = arith.extui %5 : vector<2x16x8xi1> to vector<2x16x8xi32>
    %cst_8 = arith.constant dense<0> : vector<2x16x8xi32>
    %8 = arith.cmpi ne, %6, %cst_8 : vector<2x16x8xi32>
    tpu.vector_store %arg4[%c0_6, %c0_7, %c16], %7 {strides = array<i32>} : memref<2x24x24xi32, #tpu.memory_space<vmem>>, vector<2x16x8xi32>,
    %false = arith.constant false
    %9 = vector.broadcast %false : i1 to vector<2x8x16xi1>
    %c0_9 = arith.constant 0 : index
    %c16_10 = arith.constant 16 : index
    %c0_11 = arith.constant 0 : index
    %10 = vector.load %arg4[%c0_9, %c16_10, %c0_11] : memref<2x24x24xi32, #tpu.memory_space<vmem>>, vector<2x8x16xi32>
    %11 = arith.extui %9 : vector<2x8x16xi1> to vector<2x8x16xi32>
    %cst_12 = arith.constant dense<0> : vector<2x8x16xi32>
    %12 = arith.cmpi ne, %10, %cst_12 : vector<2x8x16xi32>
    tpu.vector_store %arg4[%c0_9, %c16_10, %c0_11], %11 {strides = array<i32>} : memref<2x24x24xi32, #tpu.memory_space<vmem>>, vector<2x8x16xi32>,
    %c0_13 = arith.constant 0 : index
    %c0_14 = arith.constant 0 : index
    %c0_15 = arith.constant 0 : index
    %13 = vector.load %arg2[%c0_13, %c0_14, %c0_15] : memref<2x1x8xi32, #tpu.memory_space<vmem>>, vector<2x1x8xi32>
    %cst_16 = arith.constant dense<0> : vector<2x1x8xi32>
    %14 = arith.cmpi ne, %13, %cst_16 : vector<2x1x8xi32>
    %c0_17 = arith.constant 0 : index
    %c0_18 = arith.constant 0 : index
    %c0_19 = arith.constant 0 : index
    %15 = vector.load %arg3[%c0_17, %c0_18, %c0_19] : memref<2x8x8xi32, #tpu.memory_space<vmem>>, vector<2x8x8xi32>
    %cst_20 = arith.constant dense<0> : vector<2x8x8xi32>
    %16 = arith.cmpi ne, %15, %cst_20 : vector<2x8x8xi32>
    %17 = vector.broadcast %14 : vector<2x1x8xi1> to vector<2x8x8xi1>
    %18 = arith.ori %17, %16 : vector<2x8x8xi1>
    %c0_21 = arith.constant 0 : index
    %c16_22 = arith.constant 16 : index
    %c16_23 = arith.constant 16 : index
    %19 = vector.load %arg4[%c0_21, %c16_22, %c16_23] : memref<2x24x24xi32, #tpu.memory_space<vmem>>, vector<2x8x8xi32>
    %20 = arith.extui %18 : vector<2x8x8xi1> to vector<2x8x8xi32>
    %cst_24 = arith.constant dense<0> : vector<2x8x8xi32>
    %21 = arith.cmpi ne, %19, %cst_24 : vector<2x8x8xi32>
    tpu.vector_store %arg4[%c0_21, %c16_22, %c16_23], %20 {strides = array<i32>} : memref<2x24x24xi32, #tpu.memory_space<vmem>>, vector<2x8x8xi32>,
    return
  }
  func.func @transform_0(%arg0: i32) -> (i32, i32, i32) {
    %c0_i32 = arith.constant 0 : i32
    %c0_i32_0 = arith.constant 0 : i32
    %c0_i32_1 = arith.constant 0 : i32
    return %arg0, %c0_i32, %c0_i32_0 : i32, i32, i32
  }
  func.func @transform_1(%arg0: i32) -> (i32, i32, i32) {
    %c0_i32 = arith.constant 0 : i32
    %c0_i32_0 = arith.constant 0 : i32
    %c0_i32_1 = arith.constant 0 : i32
    return %arg0, %c0_i32, %c0_i32_0 : i32, i32, i32
  }
  func.func @transform_2(%arg0: i32) -> (i32, i32, i32) {
    %c0_i32 = arith.constant 0 : i32
    %c0_i32_0 = arith.constant 0 : i32
    %c0_i32_1 = arith.constant 0 : i32
    return %arg0, %c0_i32, %c0_i32_0 : i32, i32, i32
  }
  func.func @transform_3(%arg0: i32) -> (i32, i32, i32) {
    %c0_i32 = arith.constant 0 : i32
    %c0_i32_0 = arith.constant 0 : i32
    %c0_i32_1 = arith.constant 0 : i32
    return %arg0, %c0_i32, %c0_i32_0 : i32, i32, i32
  }
}

</mosaic_0001>

<bundles_post_ra>
// kernel: tpu_custom_call.1
= control target key start
LH: loop header
LB: loop body
LE: loop exit
PB: predicated region body
PF: predicated region fallthrough
CT: control target
= control target key end

     0   :  { %v48_v0 = vlaneseq  ;;  %vm26_vm0 = vcmask 130048   ;;  %v75_v3 = vmov 0   ;;  %vm31_vm3 = vcmask 195712   ;;  %s77_s18 = smov 16   ;;  %s171_s1 = inlined_call_operand.vmem [shape: s32[2,1,8], index: 1, kind: input, shape index: {}]   ;;  %s172_s2 = inlined_call_operand.vmem [shape: s32[2,8,8], index: 2, kind: input, shape index: {}]   ;;  %s173_s3 = inlined_call_operand.vmem [shape: s32[2,24,24], index: 3, kind: output, shape index: {}]   ;;  %s174_s0 = inlined_call_operand.vmem [shape: s32[2,16,16], index: 0, kind: input, shape index: {}]  }
   0x1   :  { %v38_v1 = vld [vmem:[%s171_s1] sm:$0x1]  ;;  %v39_v2 = vld [vmem:[%s171_s1 + $0x1] sm:$0x1]  ;;  %36 = vst.msk [vmem:[%s173_s3 + $0x10] sm:$0xff] %vm26_vm0, %v75_v3  ;;  %37 = vst.msk [vmem:[%s173_s3 + $0x28] sm:$0xff] %vm26_vm0, %v75_v3 }
   0x2   :  { %vm40_vm1 = vcmp.ne.s32.totalorder %v38_v1, 0  ;;  %v42_v4 = vld [vmem:[%s172_s2] sm:$0xff]  ;;  %v49_v5 = vshrl.u32 %v48_v0, 7  ;;  %vm41_vm2 = vcmp.ne.s32.totalorder %v39_v2, 0  ;;  %v15_v9 = vld [vmem:[%s174_s0 + $0x8] sm:$0xff]  ;;  %v16_v10 = vld [vmem:[%s174_s0 + $0x10] sm:$0xff] }
   0x3   :  { %v14_v6 = vld [vmem:[%s174_s0] sm:$0xff]  ;;  %v46_v7 = vsel %vm40_vm1, 1, %v75_v3  ;;  %v47_v8 = vsel %vm41_vm2, 1, %v75_v3  ;;  %v17_v11 = vld [vmem:[%s174_s0 + $0x18] sm:$0xff]  ;;  %v43_v13 = vld [vmem:[%s172_s2 + $0x8] sm:$0xff]  ;;  %vm19_vm5 = vcmp.ne.s32.totalorder %v15_v9, 0 }
   0x4   :  { %v50_v12 = vsub.s32 0, %v49_v5  ;;  %vm18_vm4 = vcmp.ne.s32.totalorder %v14_v6, 0  ;;  %vm20_vm6 = vcmp.ne.s32.totalorder %v16_v10, 0  ;;  %vm21_vm7 = vcmp.ne.s32.totalorder %v17_v11, 0 }
   0x5   :  { %v22_v14 = vsel %vm18_vm4, 1, %v75_v3  ;;  %v23_v15 = vsel %vm19_vm5, 1, %v75_v3  ;;  %v24_v16 = vsel %vm20_vm6, 1, %v75_v3  ;;  %vm44_vm8 = vcmp.ne.s32.totalorder %v42_v4, 0 }
   0x6   :  { %v51_v17 = vrot.slane %v46_v7, %v50_v12  ;;  %v55_v18 = vrot.slane %v47_v8, %v50_v12  ;;  %v25_v19 = vsel %vm21_vm7, 1, %v75_v3  ;;  %27 = vst.msk [vmem:[%s173_s3] sm:$0xff] %vm26_vm0, %v22_v14  ;;  %28 = vst.msk [vmem:[%s173_s3 + $0x8] sm:$0xff] %vm26_vm0, %v23_v15  ;;  %vm45_vm9 = vcmp.ne.s32.totalorder %v43_v13, 0 }
   0x7   :  { %29 = vst.msk [vmem:[%s173_s3 + $0x18] sm:$0xff] %vm26_vm0, %v24_v16  ;;  %30 = vst.msk [vmem:[%s173_s3 + $0x20] sm:$0xff] %vm26_vm0, %v25_v19  ;;  %v76_v20 = vmov 1  }
   0x8   :  { %32 = vst.msk [vmem:[%s173_s3] sm:$0xff] %vm31_vm3, %v76_v20  ;;  %33 = vst.msk [vmem:[%s173_s3 + $0x8] sm:$0xff] %vm31_vm3, %v76_v20  ;;  %vm56_vm10 = vcmp.eq.s32.totalorder %v51_v17, 1  ;;  %vm57_vm11 = vcmp.eq.s32.totalorder %v55_v18, 1 }
   0x9   :  { %34 = vst.msk [vmem:[%s173_s3 + $0x18] sm:$0xff] %vm31_vm3, %v76_v20  ;;  %35 = vst.msk [vmem:[%s173_s3 + $0x20] sm:$0xff] %vm31_vm3, %v76_v20 }
   0xa   :  { %vm58_vm12 = vmor %vm56_vm10, %vm44_vm8 }
   0xb   :  { %v60_v21 = vsel %vm58_vm12, 1, %v75_v3  ;;  %vm59_vm13 = vmor %vm57_vm11, %vm45_vm9 }
   0xc   :  { %62 = vrot.lane.b32.xlu0 %v60_v21, %s77_s18  ;;  %v61_v22 = vsel %vm59_vm13, 1, %v75_v3 }
  0x10   :  { %64 = vrot.lane.b32.xlu0 %v61_v22, %s77_s18 }
  0x7e   :  { %v63_v23 = vpop.permute.xlu0 %62 }
  0x7f   :  { %66 = vst.msk [vmem:[%s173_s3 + $0x10] sm:$0xff] %vm31_vm3, %v63_v23 }
  0x82   :  { %v65_v24 = vpop.permute.xlu0 %64 }
  0x83   :  { %67 = vst.msk [vmem:[%s173_s3 + $0x28] sm:$0xff] %vm31_vm3, %v65_v24 }

</bundles_post_ra>
